<compile_context>
chip_gen: v7x
topology: tpu7x:2x2x1
jax: 0.10.0
libtpu: 0.0.40
codegen_flags: <defaults>
</compile_context>

<pallas_src>
import functools

import jax
import jax.numpy as jnp
from jax.experimental import pallas as pl
from jax.experimental.pallas import tpu as pltpu

_NEG_LARGE = -1e30  # finite "-inf": exp() underflows to 0, no inf-inf NaNs


def _round_up(x, m):
    return ((x + m - 1) // m) * m


def cbow_kernel(idx_ref, emb_ref, w_ref, b_ref, out_ref,
                mean_scr, m_scr, s_scr, cache_scr, *, inv_c):
    """One V-tile grid step.

    idx_ref   : (B, C) int32, SMEM (scalar prefetch)
    emb_ref   : (V, E) f32 VMEM, full table, resident across the grid
    w_ref     : (TV, E) linear-weight tile (PyTorch (out, in) layout)
    b_ref     : (1, TV) f32 bias tile (padded vocab lanes hold _NEG_LARGE)
    out_ref   : (B, v_pad) f32 log-prob block, resident, written in last step
    mean_scr  : (B, E)  mean context embedding (computed once in step 0)
    m_scr     : (B, 1)  f32 running max
    s_scr     : (B, 1)  f32 running sum-exp
    cache_scr : (nv, B, TV) f32 cached per-tile logits
    """
    j = pl.program_id(0)
    nv = pl.num_programs(0)
    B, C = idx_ref.shape
    tv = w_ref.shape[0]

    # ---- one-time: gather the B*C embedding rows from VMEM and average ----
    @pl.when(j == 0)
    def _init():
        for b in range(B):
            acc = emb_ref[pl.ds(idx_ref[b, 0], 1), :].astype(jnp.float32)
            for c in range(1, C):
                acc = acc + emb_ref[pl.ds(idx_ref[b, c], 1), :].astype(jnp.float32)
            mean_scr[pl.ds(b, 1), :] = (acc * inv_c).astype(mean_scr.dtype)
        m_scr[...] = jnp.full(m_scr.shape, _NEG_LARGE, m_scr.dtype)
        s_scr[...] = jnp.zeros(s_scr.shape, s_scr.dtype)

    # ---- per-tile logits: (B,E) x (TV,E) contracting over E (no transpose) ----
    logits = jax.lax.dot_general(
        mean_scr[...], w_ref[...],
        dimension_numbers=(((1,), (1,)), ((), ())),
        preferred_element_type=jnp.float32) + b_ref[...]

    cache_scr[j] = logits                       # one matmul per tile, cached

    # ---- online max / sum-exp (padded lanes carry -1e30 via the bias) ----
    m_prev = m_scr[...]
    m_new = jnp.maximum(m_prev, jnp.max(logits, axis=1, keepdims=True))
    s_scr[...] = (s_scr[...] * jnp.exp(m_prev - m_new)
                  + jnp.sum(jnp.exp(logits - m_new), axis=1, keepdims=True))
    m_scr[...] = m_new

    # ---- last tile: subtract log-sum-exp and emit the whole output once ----
    @pl.when(j == nv - 1)
    def _finalize():
        lse = m_scr[...] + jnp.log(s_scr[...])
        n_tiles = out_ref.shape[1] // tv        # static
        for t in range(n_tiles):
            out_ref[:, t * tv:(t + 1) * tv] = cache_scr[t] - lse


def cbow_forward(inputs, emb_w, lin_w, lin_b, *, v_tile=None, use_bf16=False):
    B, C = inputs.shape
    V, E = emb_w.shape

    # Large, 128-lane-aligned V tile.  Default: whole padded vocab (capped),
    # so small problems run in a single grid step with zero streaming overhead.
    if v_tile is None:
        tv = min(_round_up(V, 128), 4096)
    else:
        tv = min(max(128, _round_up(v_tile, 128)), _round_up(V, 128))
    v_pad = _round_up(V, tv)
    nv = v_pad // tv

    w_dtype = jnp.bfloat16 if use_bf16 else jnp.float32
    w_pad = jnp.pad(lin_w, ((0, v_pad - V), (0, 0))).astype(w_dtype)
    # Padded vocab lanes get a -1e30 bias: they never win the max and their
    # exp() underflows to 0, so no in-kernel vocab mask is needed.
    b_pad = jnp.full((1, v_pad), _NEG_LARGE, jnp.float32)
    b_pad = b_pad.at[0, :V].set(lin_b.astype(jnp.float32))

    # TODO(synk): add a manual-DMA gather path (table kept in HBM with
    # memory_space=pl.ANY) for embedding tables too large to hold in VMEM.
    kernel = functools.partial(cbow_kernel, inv_c=1.0 / C)

    grid_spec = pltpu.PrefetchScalarGridSpec(
        num_scalar_prefetch=1,                  # inputs -> SMEM
        grid=(nv,),                             # single pass over V tiles
        in_specs=[
            pl.BlockSpec((V, E), lambda j, idx: (0, 0)),    # emb table, resident
            pl.BlockSpec((tv, E), lambda j, idx: (j, 0)),   # lin_w tile, streamed
            pl.BlockSpec((1, tv), lambda j, idx: (0, j)),   # bias tile
        ],
        out_specs=pl.BlockSpec((B, v_pad), lambda j, idx: (0, 0)),  # resident
        scratch_shapes=[
            pltpu.VMEM((B, E), w_dtype),           # mean embedding
            pltpu.VMEM((B, 1), jnp.float32),       # running max
            pltpu.VMEM((B, 1), jnp.float32),       # running sum-exp
            pltpu.VMEM((nv, B, tv), jnp.float32),  # cached logits
        ],
    )

    # VMEM budget from the actual tile sizes (covers double buffering), capped
    # to stay comfortably inside v7x's 64 MiB physical VMEM.
    w_item = 2 if use_bf16 else 4
    vmem_bytes = (2 * (V * E * 4 + tv * E * w_item + tv * 4 + B * v_pad * 4)
                  + nv * B * tv * 4 + B * E * 4 + 2 * B * 4)
    vmem_limit = int(min(max(2 * vmem_bytes, 4 << 20), 48 << 20))

    # TODO(synk): add a leading "parallel" batch-tile grid axis so v7x's two
    # TensorCores can split the work once B is large (B=8 here -> one tile).
    out = pl.pallas_call(
        kernel,
        out_shape=jax.ShapeDtypeStruct((B, v_pad), jnp.float32),
        grid_spec=grid_spec,
        compiler_params=pltpu.CompilerParams(
            dimension_semantics=("arbitrary",),
            vmem_limit_bytes=vmem_limit),
    )(inputs.astype(jnp.int32), emb_w.astype(jnp.float32), w_pad, b_pad)
    return out[:, :V]


def reference_forward(inputs, emb_w, lin_w, lin_b):
    embedded = jnp.take(emb_w, inputs, axis=0)          # (B, C, E)
    embedded = jnp.mean(embedded, axis=1)               # (B, E)
    logits = embedded @ lin_w.T + lin_b                 # (B, V)
    return jax.nn.log_softmax(logits, axis=1)


if __name__ == "__main__":
    vocab_size = 64
    embedding_dim = 32
    batch = 8
    context = 4

    key = jax.random.PRNGKey(0)
    k_idx, k_emb, k_w, k_b = jax.random.split(key, 4)

    # Deterministic PyTorch-style init:
    #   nn.Embedding: N(0, 1);  nn.Linear: U(-1/sqrt(in), 1/sqrt(in))
    emb_w = jax.random.normal(k_emb, (vocab_size, embedding_dim), jnp.float32)
    bound = 1.0 / (embedding_dim ** 0.5)
    lin_w = jax.random.uniform(
        k_w, (vocab_size, embedding_dim), jnp.float32, -bound, bound)
    lin_b = jax.random.uniform(
        k_b, (vocab_size,), jnp.float32, -bound, bound)

    inputs = jax.random.randint(
        k_idx, (batch, context), 0, vocab_size, dtype=jnp.int32)

    log_probs = cbow_forward(inputs, emb_w, lin_w, lin_b)
    jax.block_until_ready(log_probs)

    ref = reference_forward(inputs, emb_w, lin_w, lin_b)
    assert log_probs.shape == (batch, vocab_size)
    assert jnp.allclose(log_probs, ref, atol=5e-3, rtol=5e-3), "mismatch vs reference"

    print("KERNEL_OK")
</pallas_src>

<mosaic_0001>
module attributes {stable_mosaic.version = 11 : i64} {
  func.func @cbow_kernel(%arg0: i32, %arg1: memref<8x4xi32, #tpu.memory_space<smem>>, %arg2: memref<64x32xf32, #tpu.memory_space<vmem>>, %arg3: memref<128x32xf32, #tpu.memory_space<vmem>>, %arg4: memref<1x128xf32, #tpu.memory_space<vmem>>, %arg5: memref<8x128xf32, #tpu.memory_space<vmem>>, %arg6: memref<8x32xf32, #tpu.memory_space<vmem>>, %arg7: memref<8x1xf32, #tpu.memory_space<vmem>>, %arg8: memref<8x1xf32, #tpu.memory_space<vmem>>, %arg9: memref<1x8x128xf32, #tpu.memory_space<vmem>>) attributes {dimension_semantics = [#tpu.dimension_semantics<arbitrary>], iteration_bounds = array<i64: 1>, scalar_prefetch = 1 : i64, scratch_operands = 4 : i64, tpu.core_type = #tpu.core_type<tc>, window_params = [{pipeline_mode = #tpu.pipeline_mode<synchronous>, transform_indices = @transform_0, window_bounds = array<i64: 64, 32>}, {transform_indices = @transform_1, window_bounds = array<i64: 128, 32>}, {transform_indices = @transform_2, window_bounds = array<i64: 1, 128>}, {pipeline_mode = #tpu.pipeline_mode<synchronous>, transform_indices = @transform_3, window_bounds = array<i64: 8, 128>}]} {
    %c0_i32 = arith.constant 0 : i32
    %0 = arith.cmpi eq, %arg0, %c0_i32 : i32
    %1 = arith.extui %0 : i1 to i32
    %c0_i32_0 = arith.constant 0 : i32
    %2 = arith.cmpi ne, %1, %c0_i32_0 : i32
    scf.if %2 {
      %c0_20 = arith.constant 0 : index
      %c0_21 = arith.constant 0 : index
      %32 = memref.load %arg1[%c0_20, %c0_21] : memref<8x4xi32, #tpu.memory_space<smem>>
      %33 = arith.index_cast %32 : i32 to index
      %c0_22 = arith.constant 0 : index
      %34 = vector.load %arg2[%33, %c0_22] : memref<64x32xf32, #tpu.memory_space<vmem>>, vector<1x32xf32>
      %c0_23 = arith.constant 0 : index
      %c1 = arith.constant 1 : index
      %35 = memref.load %arg1[%c0_23, %c1] : memref<8x4xi32, #tpu.memory_space<smem>>
      %36 = arith.index_cast %35 : i32 to index
      %c0_24 = arith.constant 0 : index
      %37 = vector.load %arg2[%36, %c0_24] : memref<64x32xf32, #tpu.memory_space<vmem>>, vector<1x32xf32>
      %38 = arith.addf %34, %37 : vector<1x32xf32>
      %c0_25 = arith.constant 0 : index
      %c2 = arith.constant 2 : index
      %39 = memref.load %arg1[%c0_25, %c2] : memref<8x4xi32, #tpu.memory_space<smem>>
      %40 = arith.index_cast %39 : i32 to index
      %c0_26 = arith.constant 0 : index
      %41 = vector.load %arg2[%40, %c0_26] : memref<64x32xf32, #tpu.memory_space<vmem>>, vector<1x32xf32>
      %42 = arith.addf %38, %41 : vector<1x32xf32>
      %c0_27 = arith.constant 0 : index
      %c3 = arith.constant 3 : index
      %43 = memref.load %arg1[%c0_27, %c3] : memref<8x4xi32, #tpu.memory_space<smem>>
      %44 = arith.index_cast %43 : i32 to index
      %c0_28 = arith.constant 0 : index
      %45 = vector.load %arg2[%44, %c0_28] : memref<64x32xf32, #tpu.memory_space<vmem>>, vector<1x32xf32>
      %46 = arith.addf %42, %45 : vector<1x32xf32>
      %cst_29 = arith.constant 2.500000e-01 : f32
      %47 = vector.broadcast %cst_29 : f32 to vector<1x32xf32>
      %48 = arith.mulf %46, %47 : vector<1x32xf32>
      %c0_30 = arith.constant 0 : index
      %c0_31 = arith.constant 0 : index
      %49 = vector.load %arg6[%c0_30, %c0_31] : memref<8x32xf32, #tpu.memory_space<vmem>>, vector<1x32xf32>
      tpu.vector_store %arg6[%c0_30, %c0_31], %48 {strides = array<i32>} : memref<8x32xf32, #tpu.memory_space<vmem>>, vector<1x32xf32>,
      %c1_32 = arith.constant 1 : index
      %c0_33 = arith.constant 0 : index
      %50 = memref.load %arg1[%c1_32, %c0_33] : memref<8x4xi32, #tpu.memory_space<smem>>
      %51 = arith.index_cast %50 : i32 to index
      %c0_34 = arith.constant 0 : index
      %52 = vector.load %arg2[%51, %c0_34] : memref<64x32xf32, #tpu.memory_space<vmem>>, vector<1x32xf32>
      %c1_35 = arith.constant 1 : index
      %c1_36 = arith.constant 1 : index
      %53 = memref.load %arg1[%c1_35, %c1_36] : memref<8x4xi32, #tpu.memory_space<smem>>
      %54 = arith.index_cast %53 : i32 to index
      %c0_37 = arith.constant 0 : index
      %55 = vector.load %arg2[%54, %c0_37] : memref<64x32xf32, #tpu.memory_space<vmem>>, vector<1x32xf32>
      %56 = arith.addf %52, %55 : vector<1x32xf32>
      %c1_38 = arith.constant 1 : index
      %c2_39 = arith.constant 2 : index
      %57 = memref.load %arg1[%c1_38, %c2_39] : memref<8x4xi32, #tpu.memory_space<smem>>
      %58 = arith.index_cast %57 : i32 to index
      %c0_40 = arith.constant 0 : index
      %59 = vector.load %arg2[%58, %c0_40] : memref<64x32xf32, #tpu.memory_space<vmem>>, vector<1x32xf32>
      %60 = arith.addf %56, %59 : vector<1x32xf32>
      %c1_41 = arith.constant 1 : index
      %c3_42 = arith.constant 3 : index
      %61 = memref.load %arg1[%c1_41, %c3_42] : memref<8x4xi32, #tpu.memory_space<smem>>
      %62 = arith.index_cast %61 : i32 to index
      %c0_43 = arith.constant 0 : index
      %63 = vector.load %arg2[%62, %c0_43] : memref<64x32xf32, #tpu.memory_space<vmem>>, vector<1x32xf32>
      %64 = arith.addf %60, %63 : vector<1x32xf32>
      %cst_44 = arith.constant 2.500000e-01 : f32
      %65 = vector.broadcast %cst_44 : f32 to vector<1x32xf32>
      %66 = arith.mulf %64, %65 : vector<1x32xf32>
      %c1_45 = arith.constant 1 : index
      %c0_46 = arith.constant 0 : index
      %67 = vector.load %arg6[%c1_45, %c0_46] : memref<8x32xf32, #tpu.memory_space<vmem>>, vector<1x32xf32>
      tpu.vector_store %arg6[%c1_45, %c0_46], %66 {strides = array<i32>} : memref<8x32xf32, #tpu.memory_space<vmem>>, vector<1x32xf32>,
      %c2_47 = arith.constant 2 : index
      %c0_48 = arith.constant 0 : index
      %68 = memref.load %arg1[%c2_47, %c0_48] : memref<8x4xi32, #tpu.memory_space<smem>>
      %69 = arith.index_cast %68 : i32 to index
      %c0_49 = arith.constant 0 : index
      %70 = vector.load %arg2[%69, %c0_49] : memref<64x32xf32, #tpu.memory_space<vmem>>, vector<1x32xf32>
      %c2_50 = arith.constant 2 : index
      %c1_51 = arith.constant 1 : index
      %71 = memref.load %arg1[%c2_50, %c1_51] : memref<8x4xi32, #tpu.memory_space<smem>>
      %72 = arith.index_cast %71 : i32 to index
      %c0_52 = arith.constant 0 : index
      %73 = vector.load %arg2[%72, %c0_52] : memref<64x32xf32, #tpu.memory_space<vmem>>, vector<1x32xf32>
      %74 = arith.addf %70, %73 : vector<1x32xf32>
      %c2_53 = arith.constant 2 : index
      %c2_54 = arith.constant 2 : index
      %75 = memref.load %arg1[%c2_53, %c2_54] : memref<8x4xi32, #tpu.memory_space<smem>>
      %76 = arith.index_cast %75 : i32 to index
      %c0_55 = arith.constant 0 : index
      %77 = vector.load %arg2[%76, %c0_55] : memref<64x32xf32, #tpu.memory_space<vmem>>, vector<1x32xf32>
      %78 = arith.addf %74, %77 : vector<1x32xf32>
      %c2_56 = arith.constant 2 : index
      %c3_57 = arith.constant 3 : index
      %79 = memref.load %arg1[%c2_56, %c3_57] : memref<8x4xi32, #tpu.memory_space<smem>>
      %80 = arith.index_cast %79 : i32 to index
      %c0_58 = arith.constant 0 : index
      %81 = vector.load %arg2[%80, %c0_58] : memref<64x32xf32, #tpu.memory_space<vmem>>, vector<1x32xf32>
      %82 = arith.addf %78, %81 : vector<1x32xf32>
      %cst_59 = arith.constant 2.500000e-01 : f32
      %83 = vector.broadcast %cst_59 : f32 to vector<1x32xf32>
      %84 = arith.mulf %82, %83 : vector<1x32xf32>
      %c2_60 = arith.constant 2 : index
      %c0_61 = arith.constant 0 : index
      %85 = vector.load %arg6[%c2_60, %c0_61] : memref<8x32xf32, #tpu.memory_space<vmem>>, vector<1x32xf32>
      tpu.vector_store %arg6[%c2_60, %c0_61], %84 {strides = array<i32>} : memref<8x32xf32, #tpu.memory_space<vmem>>, vector<1x32xf32>,
      %c3_62 = arith.constant 3 : index
      %c0_63 = arith.constant 0 : index
      %86 = memref.load %arg1[%c3_62, %c0_63] : memref<8x4xi32, #tpu.memory_space<smem>>
      %87 = arith.index_cast %86 : i32 to index
      %c0_64 = arith.constant 0 : index
      %88 = vector.load %arg2[%87, %c0_64] : memref<64x32xf32, #tpu.memory_space<vmem>>, vector<1x32xf32>
      %c3_65 = arith.constant 3 : index
      %c1_66 = arith.constant 1 : index
      %89 = memref.load %arg1[%c3_65, %c1_66] : memref<8x4xi32, #tpu.memory_space<smem>>
      %90 = arith.index_cast %89 : i32 to index
      %c0_67 = arith.constant 0 : index
      %91 = vector.load %arg2[%90, %c0_67] : memref<64x32xf32, #tpu.memory_space<vmem>>, vector<1x32xf32>
      %92 = arith.addf %88, %91 : vector<1x32xf32>
      %c3_68 = arith.constant 3 : index
      %c2_69 = arith.constant 2 : index
      %93 = memref.load %arg1[%c3_68, %c2_69] : memref<8x4xi32, #tpu.memory_space<smem>>
      %94 = arith.index_cast %93 : i32 to index
      %c0_70 = arith.constant 0 : index
      %95 = vector.load %arg2[%94, %c0_70] : memref<64x32xf32, #tpu.memory_space<vmem>>, vector<1x32xf32>
      %96 = arith.addf %92, %95 : vector<1x32xf32>
      %c3_71 = arith.constant 3 : index
      %c3_72 = arith.constant 3 : index
      %97 = memref.load %arg1[%c3_71, %c3_72] : memref<8x4xi32, #tpu.memory_space<smem>>
      %98 = arith.index_cast %97 : i32 to index
      %c0_73 = arith.constant 0 : index
      %99 = vector.load %arg2[%98, %c0_73] : memref<64x32xf32, #tpu.memory_space<vmem>>, vector<1x32xf32>
      %100 = arith.addf %96, %99 : vector<1x32xf32>
      %cst_74 = arith.constant 2.500000e-01 : f32
      %101 = vector.broadcast %cst_74 : f32 to vector<1x32xf32>
      %102 = arith.mulf %100, %101 : vector<1x32xf32>
      %c3_75 = arith.constant 3 : index
      %c0_76 = arith.constant 0 : index
      %103 = vector.load %arg6[%c3_75, %c0_76] : memref<8x32xf32, #tpu.memory_space<vmem>>, vector<1x32xf32>
      tpu.vector_store %arg6[%c3_75, %c0_76], %102 {strides = array<i32>} : memref<8x32xf32, #tpu.memory_space<vmem>>, vector<1x32xf32>,
      %c4 = arith.constant 4 : index
      %c0_77 = arith.constant 0 : index
      %104 = memref.load %arg1[%c4, %c0_77] : memref<8x4xi32, #tpu.memory_space<smem>>
      %105 = arith.index_cast %104 : i32 to index
      %c0_78 = arith.constant 0 : index
      %106 = vector.load %arg2[%105, %c0_78] : memref<64x32xf32, #tpu.memory_space<vmem>>, vector<1x32xf32>
      %c4_79 = arith.constant 4 : index
      %c1_80 = arith.constant 1 : index
      %107 = memref.load %arg1[%c4_79, %c1_80] : memref<8x4xi32, #tpu.memory_space<smem>>
      %108 = arith.index_cast %107 : i32 to index
      %c0_81 = arith.constant 0 : index
      %109 = vector.load %arg2[%108, %c0_81] : memref<64x32xf32, #tpu.memory_space<vmem>>, vector<1x32xf32>
      %110 = arith.addf %106, %109 : vector<1x32xf32>
      %c4_82 = arith.constant 4 : index
      %c2_83 = arith.constant 2 : index
      %111 = memref.load %arg1[%c4_82, %c2_83] : memref<8x4xi32, #tpu.memory_space<smem>>
      %112 = arith.index_cast %111 : i32 to index
      %c0_84 = arith.constant 0 : index
      %113 = vector.load %arg2[%112, %c0_84] : memref<64x32xf32, #tpu.memory_space<vmem>>, vector<1x32xf32>
      %114 = arith.addf %110, %113 : vector<1x32xf32>
      %c4_85 = arith.constant 4 : index
      %c3_86 = arith.constant 3 : index
      %115 = memref.load %arg1[%c4_85, %c3_86] : memref<8x4xi32, #tpu.memory_space<smem>>
      %116 = arith.index_cast %115 : i32 to index
      %c0_87 = arith.constant 0 : index
      %117 = vector.load %arg2[%116, %c0_87] : memref<64x32xf32, #tpu.memory_space<vmem>>, vector<1x32xf32>
      %118 = arith.addf %114, %117 : vector<1x32xf32>
      %cst_88 = arith.constant 2.500000e-01 : f32
      %119 = vector.broadcast %cst_88 : f32 to vector<1x32xf32>
      %120 = arith.mulf %118, %119 : vector<1x32xf32>
      %c4_89 = arith.constant 4 : index
      %c0_90 = arith.constant 0 : index
      %121 = vector.load %arg6[%c4_89, %c0_90] : memref<8x32xf32, #tpu.memory_space<vmem>>, vector<1x32xf32>
      tpu.vector_store %arg6[%c4_89, %c0_90], %120 {strides = array<i32>} : memref<8x32xf32, #tpu.memory_space<vmem>>, vector<1x32xf32>,
      %c5 = arith.constant 5 : index
      %c0_91 = arith.constant 0 : index
      %122 = memref.load %arg1[%c5, %c0_91] : memref<8x4xi32, #tpu.memory_space<smem>>
      %123 = arith.index_cast %122 : i32 to index
      %c0_92 = arith.constant 0 : index
      %124 = vector.load %arg2[%123, %c0_92] : memref<64x32xf32, #tpu.memory_space<vmem>>, vector<1x32xf32>
      %c5_93 = arith.constant 5 : index
      %c1_94 = arith.constant 1 : index
      %125 = memref.load %arg1[%c5_93, %c1_94] : memref<8x4xi32, #tpu.memory_space<smem>>
      %126 = arith.index_cast %125 : i32 to index
      %c0_95 = arith.constant 0 : index
      %127 = vector.load %arg2[%126, %c0_95] : memref<64x32xf32, #tpu.memory_space<vmem>>, vector<1x32xf32>
      %128 = arith.addf %124, %127 : vector<1x32xf32>
      %c5_96 = arith.constant 5 : index
      %c2_97 = arith.constant 2 : index
      %129 = memref.load %arg1[%c5_96, %c2_97] : memref<8x4xi32, #tpu.memory_space<smem>>
      %130 = arith.index_cast %129 : i32 to index
      %c0_98 = arith.constant 0 : index
      %131 = vector.load %arg2[%130, %c0_98] : memref<64x32xf32, #tpu.memory_space<vmem>>, vector<1x32xf32>
      %132 = arith.addf %128, %131 : vector<1x32xf32>
      %c5_99 = arith.constant 5 : index
      %c3_100 = arith.constant 3 : index
      %133 = memref.load %arg1[%c5_99, %c3_100] : memref<8x4xi32, #tpu.memory_space<smem>>
      %134 = arith.index_cast %133 : i32 to index
      %c0_101 = arith.constant 0 : index
      %135 = vector.load %arg2[%134, %c0_101] : memref<64x32xf32, #tpu.memory_space<vmem>>, vector<1x32xf32>
      %136 = arith.addf %132, %135 : vector<1x32xf32>
      %cst_102 = arith.constant 2.500000e-01 : f32
      %137 = vector.broadcast %cst_102 : f32 to vector<1x32xf32>
      %138 = arith.mulf %136, %137 : vector<1x32xf32>
      %c5_103 = arith.constant 5 : index
      %c0_104 = arith.constant 0 : index
      %139 = vector.load %arg6[%c5_103, %c0_104] : memref<8x32xf32, #tpu.memory_space<vmem>>, vector<1x32xf32>
      tpu.vector_store %arg6[%c5_103, %c0_104], %138 {strides = array<i32>} : memref<8x32xf32, #tpu.memory_space<vmem>>, vector<1x32xf32>,
      %c6 = arith.constant 6 : index
      %c0_105 = arith.constant 0 : index
      %140 = memref.load %arg1[%c6, %c0_105] : memref<8x4xi32, #tpu.memory_space<smem>>
      %141 = arith.index_cast %140 : i32 to index
      %c0_106 = arith.constant 0 : index
      %142 = vector.load %arg2[%141, %c0_106] : memref<64x32xf32, #tpu.memory_space<vmem>>, vector<1x32xf32>
      %c6_107 = arith.constant 6 : index
      %c1_108 = arith.constant 1 : index
      %143 = memref.load %arg1[%c6_107, %c1_108] : memref<8x4xi32, #tpu.memory_space<smem>>
      %144 = arith.index_cast %143 : i32 to index
      %c0_109 = arith.constant 0 : index
      %145 = vector.load %arg2[%144, %c0_109] : memref<64x32xf32, #tpu.memory_space<vmem>>, vector<1x32xf32>
      %146 = arith.addf %142, %145 : vector<1x32xf32>
      %c6_110 = arith.constant 6 : index
      %c2_111 = arith.constant 2 : index
      %147 = memref.load %arg1[%c6_110, %c2_111] : memref<8x4xi32, #tpu.memory_space<smem>>
      %148 = arith.index_cast %147 : i32 to index
      %c0_112 = arith.constant 0 : index
      %149 = vector.load %arg2[%148, %c0_112] : memref<64x32xf32, #tpu.memory_space<vmem>>, vector<1x32xf32>
      %150 = arith.addf %146, %149 : vector<1x32xf32>
      %c6_113 = arith.constant 6 : index
      %c3_114 = arith.constant 3 : index
      %151 = memref.load %arg1[%c6_113, %c3_114] : memref<8x4xi32, #tpu.memory_space<smem>>
      %152 = arith.index_cast %151 : i32 to index
      %c0_115 = arith.constant 0 : index
      %153 = vector.load %arg2[%152, %c0_115] : memref<64x32xf32, #tpu.memory_space<vmem>>, vector<1x32xf32>
      %154 = arith.addf %150, %153 : vector<1x32xf32>
      %cst_116 = arith.constant 2.500000e-01 : f32
      %155 = vector.broadcast %cst_116 : f32 to vector<1x32xf32>
      %156 = arith.mulf %154, %155 : vector<1x32xf32>
      %c6_117 = arith.constant 6 : index
      %c0_118 = arith.constant 0 : index
      %157 = vector.load %arg6[%c6_117, %c0_118] : memref<8x32xf32, #tpu.memory_space<vmem>>, vector<1x32xf32>
      tpu.vector_store %arg6[%c6_117, %c0_118], %156 {strides = array<i32>} : memref<8x32xf32, #tpu.memory_space<vmem>>, vector<1x32xf32>,
      %c7 = arith.constant 7 : index
      %c0_119 = arith.constant 0 : index
      %158 = memref.load %arg1[%c7, %c0_119] : memref<8x4xi32, #tpu.memory_space<smem>>
      %159 = arith.index_cast %158 : i32 to index
      %c0_120 = arith.constant 0 : index
      %160 = vector.load %arg2[%159, %c0_120] : memref<64x32xf32, #tpu.memory_space<vmem>>, vector<1x32xf32>
      %c7_121 = arith.constant 7 : index
      %c1_122 = arith.constant 1 : index
      %161 = memref.load %arg1[%c7_121, %c1_122] : memref<8x4xi32, #tpu.memory_space<smem>>
      %162 = arith.index_cast %161 : i32 to index
      %c0_123 = arith.constant 0 : index
      %163 = vector.load %arg2[%162, %c0_123] : memref<64x32xf32, #tpu.memory_space<vmem>>, vector<1x32xf32>
      %164 = arith.addf %160, %163 : vector<1x32xf32>
      %c7_124 = arith.constant 7 : index
      %c2_125 = arith.constant 2 : index
      %165 = memref.load %arg1[%c7_124, %c2_125] : memref<8x4xi32, #tpu.memory_space<smem>>
      %166 = arith.index_cast %165 : i32 to index
      %c0_126 = arith.constant 0 : index
      %167 = vector.load %arg2[%166, %c0_126] : memref<64x32xf32, #tpu.memory_space<vmem>>, vector<1x32xf32>
      %168 = arith.addf %164, %167 : vector<1x32xf32>
      %c7_127 = arith.constant 7 : index
      %c3_128 = arith.constant 3 : index
      %169 = memref.load %arg1[%c7_127, %c3_128] : memref<8x4xi32, #tpu.memory_space<smem>>
      %170 = arith.index_cast %169 : i32 to index
      %c0_129 = arith.constant 0 : index
      %171 = vector.load %arg2[%170, %c0_129] : memref<64x32xf32, #tpu.memory_space<vmem>>, vector<1x32xf32>
      %172 = arith.addf %168, %171 : vector<1x32xf32>
      %cst_130 = arith.constant 2.500000e-01 : f32
      %173 = vector.broadcast %cst_130 : f32 to vector<1x32xf32>
      %174 = arith.mulf %172, %173 : vector<1x32xf32>
      %c7_131 = arith.constant 7 : index
      %c0_132 = arith.constant 0 : index
      %175 = vector.load %arg6[%c7_131, %c0_132] : memref<8x32xf32, #tpu.memory_space<vmem>>, vector<1x32xf32>
      tpu.vector_store %arg6[%c7_131, %c0_132], %174 {strides = array<i32>} : memref<8x32xf32, #tpu.memory_space<vmem>>, vector<1x32xf32>,
      %cst_133 = arith.constant -1.000000e+30 : f32
      %176 = vector.broadcast %cst_133 : f32 to vector<8x1xf32>
      %c0_134 = arith.constant 0 : index
      %c0_135 = arith.constant 0 : index
      %177 = vector.load %arg7[%c0_134, %c0_135] : memref<8x1xf32, #tpu.memory_space<vmem>>, vector<8x1xf32>
      tpu.vector_store %arg7[%c0_134, %c0_135], %176 {strides = array<i32>} : memref<8x1xf32, #tpu.memory_space<vmem>>, vector<8x1xf32>,
      %cst_136 = arith.constant 0.000000e+00 : f32
      %178 = vector.broadcast %cst_136 : f32 to vector<8x1xf32>
      %c0_137 = arith.constant 0 : index
      %c0_138 = arith.constant 0 : index
      %179 = vector.load %arg8[%c0_137, %c0_138] : memref<8x1xf32, #tpu.memory_space<vmem>>, vector<8x1xf32>
      tpu.vector_store %arg8[%c0_137, %c0_138], %178 {strides = array<i32>} : memref<8x1xf32, #tpu.memory_space<vmem>>, vector<8x1xf32>,
    } else {
    }
    %c0 = arith.constant 0 : index
    %c0_1 = arith.constant 0 : index
    %3 = vector.load %arg6[%c0, %c0_1] : memref<8x32xf32, #tpu.memory_space<vmem>>, vector<8x32xf32>
    %c0_2 = arith.constant 0 : index
    %c0_3 = arith.constant 0 : index
    %4 = vector.load %arg3[%c0_2, %c0_3] : memref<128x32xf32, #tpu.memory_space<vmem>>, vector<128x32xf32>
    %cst = arith.constant dense<0.000000e+00> : vector<8x128xf32>
    %5 = tpu.matmul %3, %4, %cst {dimension_numbers = #tpu.dot_dimension_numbers<[1], [1], [0], [0], [0, 0, 1, 0], [], []>} : vector<8x32xf32>, vector<128x32xf32>, vector<8x128xf32> -> vector<8x128xf32>
    %c0_4 = arith.constant 0 : index
    %c0_5 = arith.constant 0 : index
    %6 = vector.load %arg4[%c0_4, %c0_5] : memref<1x128xf32, #tpu.memory_space<vmem>>, vector<1x128xf32>
    %7 = vector.broadcast %6 : vector<1x128xf32> to vector<8x128xf32>
    %8 = arith.addf %5, %7 : vector<8x128xf32>
    %9 = arith.index_cast %arg0 : i32 to index
    %c0_6 = arith.constant 0 : index
    %c0_7 = arith.constant 0 : index
    %10 = vector.load %arg9[%9, %c0_6, %c0_7] : memref<1x8x128xf32, #tpu.memory_space<vmem>>, vector<1x8x128xf32>
    %11 = vector.shape_cast %10 : vector<1x8x128xf32> to vector<8x128xf32>
    %12 = vector.shape_cast %8 : vector<8x128xf32> to vector<1x8x128xf32>
    tpu.vector_store %arg9[%9, %c0_6, %c0_7], %12 {strides = array<i32>} : memref<1x8x128xf32, #tpu.memory_space<vmem>>, vector<1x8x128xf32>,
    %c0_8 = arith.constant 0 : index
    %c0_9 = arith.constant 0 : index
    %13 = vector.load %arg7[%c0_8, %c0_9] : memref<8x1xf32, #tpu.memory_space<vmem>>, vector<8x1xf32>
    %cst_10 = arith.constant dense<0xFF800000> : vector<8xf32>
    %14 = vector.multi_reduction <maximumf>, %8, %cst_10 [1] : vector<8x128xf32> to vector<8xf32>
    %15 = vector.shape_cast %14 : vector<8xf32> to vector<8x1xf32>
    %16 = arith.maximumf %13, %15 : vector<8x1xf32>
    %c0_11 = arith.constant 0 : index
    %c0_12 = arith.constant 0 : index
    %17 = vector.load %arg8[%c0_11, %c0_12] : memref<8x1xf32, #tpu.memory_space<vmem>>, vector<8x1xf32>
    %18 = arith.subf %13, %16 : vector<8x1xf32>
    %19 = math.exp %18 : vector<8x1xf32>
    %20 = arith.mulf %17, %19 : vector<8x1xf32>
    %21 = vector.broadcast %16 : vector<8x1xf32> to vector<8x128xf32>
    %22 = arith.subf %8, %21 : vector<8x128xf32>
    %23 = math.exp %22 : vector<8x128xf32>
    %cst_13 = arith.constant dense<0.000000e+00> : vector<8xf32>
    %24 = vector.multi_reduction <add>, %23, %cst_13 [1] : vector<8x128xf32> to vector<8xf32>
    %25 = vector.shape_cast %24 : vector<8xf32> to vector<8x1xf32>
    %26 = arith.addf %20, %25 : vector<8x1xf32>
    %c0_14 = arith.constant 0 : index
    %c0_15 = arith.constant 0 : index
    %27 = vector.load %arg8[%c0_14, %c0_15] : memref<8x1xf32, #tpu.memory_space<vmem>>, vector<8x1xf32>
    tpu.vector_store %arg8[%c0_14, %c0_15], %26 {strides = array<i32>} : memref<8x1xf32, #tpu.memory_space<vmem>>, vector<8x1xf32>,
    %c0_16 = arith.constant 0 : index
    %c0_17 = arith.constant 0 : index
    %28 = vector.load %arg7[%c0_16, %c0_17] : memref<8x1xf32, #tpu.memory_space<vmem>>, vector<8x1xf32>
    tpu.vector_store %arg7[%c0_16, %c0_17], %16 {strides = array<i32>} : memref<8x1xf32, #tpu.memory_space<vmem>>, vector<8x1xf32>,
    %c0_i32_18 = arith.constant 0 : i32
    %29 = arith.cmpi eq, %arg0, %c0_i32_18 : i32
    %30 = arith.extui %29 : i1 to i32
    %c0_i32_19 = arith.constant 0 : i32
    %31 = arith.cmpi ne, %30, %c0_i32_19 : i32
    scf.if %31 {
      %c0_20 = arith.constant 0 : index
      %c0_21 = arith.constant 0 : index
      %32 = vector.load %arg7[%c0_20, %c0_21] : memref<8x1xf32, #tpu.memory_space<vmem>>, vector<8x1xf32>
      %c0_22 = arith.constant 0 : index
      %c0_23 = arith.constant 0 : index
      %33 = vector.load %arg8[%c0_22, %c0_23] : memref<8x1xf32, #tpu.memory_space<vmem>>, vector<8x1xf32>
      %34 = math.log %33 : vector<8x1xf32>
      %35 = arith.addf %32, %34 : vector<8x1xf32>
      %c0_24 = arith.constant 0 : index
      %c0_25 = arith.constant 0 : index
      %c0_26 = arith.constant 0 : index
      %36 = vector.load %arg9[%c0_24, %c0_25, %c0_26] : memref<1x8x128xf32, #tpu.memory_space<vmem>>, vector<1x8x128xf32>
      %37 = vector.shape_cast %36 : vector<1x8x128xf32> to vector<8x128xf32>
      %38 = vector.broadcast %35 : vector<8x1xf32> to vector<8x128xf32>
      %39 = arith.subf %37, %38 : vector<8x128xf32>
      %c0_27 = arith.constant 0 : index
      %c0_28 = arith.constant 0 : index
      %40 = vector.load %arg5[%c0_27, %c0_28] : memref<8x128xf32, #tpu.memory_space<vmem>>, vector<8x128xf32>
      tpu.vector_store %arg5[%c0_27, %c0_28], %39 {strides = array<i32>} : memref<8x128xf32, #tpu.memory_space<vmem>>, vector<8x128xf32>,
    } else {
    }
    return
  }
  func.func @transform_0(%arg0: i32, %arg1: memref<8x4xi32, #tpu.memory_space<smem>>) -> (i32, i32) {
    %c0_i32 = arith.constant 0 : i32
    %c0_i32_0 = arith.constant 0 : i32
    %c0_i32_1 = arith.constant 0 : i32
    return %c0_i32, %c0_i32_0 : i32, i32
  }
  func.func @transform_1(%arg0: i32, %arg1: memref<8x4xi32, #tpu.memory_space<smem>>) -> (i32, i32) {
    %c0_i32 = arith.constant 0 : i32
    %c0_i32_0 = arith.constant 0 : i32
    return %arg0, %c0_i32 : i32, i32
  }
  func.func @transform_2(%arg0: i32, %arg1: memref<8x4xi32, #tpu.memory_space<smem>>) -> (i32, i32) {
    %c0_i32 = arith.constant 0 : i32
    %c0_i32_0 = arith.constant 0 : i32
    return %c0_i32, %arg0 : i32, i32
  }
  func.func @transform_3(%arg0: i32, %arg1: memref<8x4xi32, #tpu.memory_space<smem>>) -> (i32, i32) {
    %c0_i32 = arith.constant 0 : i32
    %c0_i32_0 = arith.constant 0 : i32
    %c0_i32_1 = arith.constant 0 : i32
    return %c0_i32, %c0_i32_0 : i32, i32
  }
}

</mosaic_0001>

<bundles_post_ra>
// kernel: tpu_custom_call.1
= control target key start
LH: loop header
LB: loop body
LE: loop exit
PB: predicated region body
PF: predicated region fallthrough
CT: control target
= control target key end

     0   :  { %s877_s0 = inlined_call_operand.vmem [shape: s32[8,4], index: 0, kind: input, shape index: {}]   ;;  %s878_s1 = inlined_call_operand.vmem [shape: f32[64,32], index: 1, kind: input, shape index: {}]   ;;  %s879_s2 = inlined_call_operand.vmem [shape: f32[128,32], index: 2, kind: input, shape index: {}]   ;;  %s880_s3 = inlined_call_operand.vmem [shape: f32[1,128], index: 3, kind: input, shape index: {}]   ;;  %s881_s4 = inlined_call_operand.hbm [shape: f32[8,128], index: 4, kind: output, shape index: {}]  }
   0x1   :  { %s9_s17 = sshll.u32 %s877_s0, 4  ;;  %s10_s17 = int_to_ptr.vmem [resolvable:$true] %s9_s17 }
   0x2   :  { %s548_s18 = scalar_lea.vmem %s10_s17, 128  ;;  %p553_p1 = scmp.lt.s32.totalorder %s10_s17, %s10_s17 }
   0x3   :  { %p549_p0 = scmp.ne.s32.totalorder %s10_s17, %s548_s18  ;;  %p554_p2 = scmp.lt.s32.totalorder %s548_s18, %s548_s18 }
   0x5   :  { %p555_p3 = por %p554_p2, %p553_p1 }
   0x7   :  { %p556_p4 = pnand %p555_p3, %p549_p0 }
   0x9   :  { %559 = shalt.err (!%p556_p4)  }
   0xa   :  { %s586_s19 = smov [#allocation7]  }
   0xb   :  { %12 = dma.vmem_to_smem %s10_s17, 128, %s586_s19, [#allocation6] }
   0xc   :  { %582 = dma.done.wait [#allocation6], 128 }
   0xd   :  { %583 = vsyncadd [#allocation6], 4294967168 }
   0xe   :  { %14 = sfence }
   0xf   :  { %v167_v0 = vld [vmem:[%s879_s2] sm:$0xff]  ;;  %v168_v1 = vld [vmem:[%s879_s2 + $0x8] sm:$0xff]  ;;  %vm190_vm0 = vcmask 261120   ;;  %vm163_vm1 = vcmask 7168   ;;  %v587_v2 = vmov 0.0|0.0   ;;  %v589_v6 = vmov 0.0  }
  0x10   :  { %501 = vmatprep.subr.bf16.mxu0 %v587_v2  ;;  %v502_v3 = vpack.c.bf16 %v168_v1, %v167_v0  ;;  %vm630_vm2 = vmpackc.low %vm190_vm0, %vm190_vm0  ;;  %v588_v5 = vmov -1e+30   ;;  %165 = vst.msk [vmem:[#allocation4] sm:$0xff] %vm163_vm1, %v589_v6  ;;  %vm590_vm3 = vmmov 0   ;;  %s26_s0 = sld [smem:[#allocation7]]  ;;  %s400_s24 = sld [smem:[#allocation7 + $0x1]] }
  0x11   :  { %164 = vst.msk [vmem:[#allocation3] sm:$0xff] %vm163_vm1, %v588_v5  ;;  %498 = vmatprep.mubr.msk.f32.mxu0 %vm590_vm3, %v589_v6  ;;  %v169_v7 = vld [vmem:[%s879_s2 + $0x10] sm:$0xff]  ;;  %v170_v8 = vld [vmem:[%s879_s2 + $0x18] sm:$0xff]  ;;  %s401_s29 = sld [smem:[#allocation7 + $0x2]]  ;;  %s402_s30 = sld [smem:[#allocation7 + $0x3]] }
  0x12   :  { %504 = vmatpush3.bf16.xpose.msk.msra.mxu0 %vm630_vm2, %v502_v3  ;;  %s403_s5 = sld [smem:[#allocation7 + $0x80]]  ;;  %s404_s6 = sld [smem:[#allocation7 + $0x81]]  ;;  %v506_v9 = vpack.c.bf16 %v170_v8, %v169_v7 }
  0x13   :  { %505 = vmatprep.subr.bf16.mxu0 %v587_v2  ;;  %s405_s7 = sld [smem:[#allocation7 + $0x82]]  ;;  %s645_s8 = sld [smem:[#allocation7 + $0x83]] }
  0x14   :  { %s407_s9 = sld [smem:[#allocation7 + $0x100]] }
  0x15   :  { %15 = vsyncpa [#allocation9], 0  ;;  %s650_s13 = sld [smem:[#allocation7 + $0x101]]  ;;  %s655_s17 = sld [smem:[#allocation7 + $0x102]]  ;;  %v171_v12 = vld [vmem:[%s879_s2 + $0x20] sm:$0xff]  ;;  %v172_v15 = vld [vmem:[%s879_s2 + $0x28] sm:$0xff] }
  0x16   :  { %s27_s12 = scalar_lea.vmem %s878_s1, %s26_s0  ;;  %s30_s16 = scalar_lea.vmem %s878_s1, %s400_s24  ;;  %v510_v23 = vpack.c.bf16 %v172_v15, %v171_v12  ;;  %vm42_vm4 = vcmask 253952   ;;  %v173_v34 = vld [vmem:[%s879_s2 + $0x30] sm:$0xff]  ;;  %v174_v35 = vld [vmem:[%s879_s2 + $0x38] sm:$0xff]  ;;  %v175_v53 = vld [vmem:[%s879_s2 + $0x40] sm:$0xff] }
  0x17   :  { %v28_v10 = vld [vmem:[%s27_s12] sm:$0x1]  ;;  %s34_s20 = scalar_lea.vmem %s878_s1, %s401_s29  ;;  %s660_s21 = sld [smem:[#allocation7 + $0x103]]  ;;  %v514_v41 = vpack.c.bf16 %v174_v35, %v173_v34  ;;  %v176_v54 = vld [vmem:[%s879_s2 + $0x48] sm:$0xff]  ;;  %v591_v34 = vmov 0  }
  0x18   :  { %v31_v11 = vld [vmem:[%s30_s16] sm:$0x1]  ;;  %s38_s25 = scalar_lea.vmem %s878_s1, %s402_s30  ;;  %s45_s28 = scalar_lea.vmem %s878_s1, %s403_s5  ;;  %v518_v62 = vpack.c.bf16 %v176_v54, %v175_v53  ;;  %540 = vset.pattern.permute.xlu0 %v591_v34  ;;  %541 = vset.pattern.permute.xlu1 %v591_v34  ;;  %v315_v35 = vld [vmem:[#allocation3] sm:$0xff] }
  0x19   :  { %v32_v13 = vadd.f32 %v31_v11, %v28_v10  ;;  %v35_v14 = vld [vmem:[%s34_s20] sm:$0x1]  ;;  %s48_s14 = scalar_lea.vmem %s878_s1, %s404_s6  ;;  %s52_s30 = scalar_lea.vmem %s878_s1, %s405_s7  ;;  %v178_v10 = vld [vmem:[%s879_s2 + $0x58] sm:$0xff] }
  0x1a   :  { %508 = vmatpush3.bf16.xpose.msk.msra.mxu0 %vm630_vm2, %v506_v9  ;;  %v39_v16 = vld [vmem:[%s38_s25] sm:$0x1]  ;;  %s56_s19 = scalar_lea.vmem %s878_s1, %s645_s8  ;;  %s62_s23 = scalar_lea.vmem %s878_s1, %s407_s9  ;;  %v177_v9 = vld [vmem:[%s879_s2 + $0x50] sm:$0xff] }
  0x1b   :  { %509 = vmatprep.subr.bf16.mxu0 %v587_v2  ;;  %v46_v17 = vld [vmem:[%s45_s28] sm:$0x1]  ;;  %v36_v18 = vadd.f32 %v35_v14, %v32_v13  ;;  %s65_s24 = scalar_lea.vmem %s878_s1, %s650_s13  ;;  %s694_s25 = sld [smem:[#allocation7 + $0x180]] }
  0x1c   :  { %v49_v19 = vld [vmem:[%s48_s14] sm:$0x1]  ;;  %s69_s8 = scalar_lea.vmem %s878_s1, %s655_s17  ;;  %s700_s27 = sld [smem:[#allocation7 + $0x181]] }
  0x1d   :  { %v53_v20 = vld [vmem:[%s52_s30] sm:$0x1]  ;;  %v50_v21 = vadd.f32 %v49_v19, %v46_v17  ;;  %v40_v24 = vadd.f32 %v39_v16, %v36_v18  ;;  %s73_s13 = scalar_lea.vmem %s878_s1, %s660_s21  ;;  %s706_s29 = sld [smem:[#allocation7 + $0x182]]  ;;  %v522_v17 = vpack.c.bf16 %v178_v10, %v177_v9 }
  0x1e   :  { %v63_v22 = vld [vmem:[%s62_s23] sm:$0x1]  ;;  %s708_s10 = sld [smem:[#allocation7 + $0x183]]  ;;  %s710_s17 = sld [smem:[#allocation7 + $0x200]] }
  0x1f   :  { %v57_v25 = vld [vmem:[%s56_s19] sm:$0x1]  ;;  %v54_v27 = vadd.f32 %v53_v20, %v50_v21  ;;  %v41_v30 = vmul.f32 0.25, %v40_v24  ;;  %s712_s11 = sld [smem:[#allocation7 + $0x201]]  ;;  %s717_s21 = sld [smem:[#allocation7 + $0x202]]  ;;  %v180_v24 = vld [vmem:[%s879_s2 + $0x68] sm:$0xff] }
  0x20   :  { %v66_v26 = vld [vmem:[%s65_s24] sm:$0x1]  ;;  %s719_s12 = sld [smem:[#allocation7 + $0x203]]  ;;  %s732_s20 = sld [smem:[#allocation7 + $0x280]] }
  0x21   :  { %v67_v28 = vadd.f32 %v66_v26, %v63_v22  ;;  %v70_v29 = vld [vmem:[%s69_s8] sm:$0x1]  ;;  %v58_v32 = vadd.f32 %v57_v25, %v54_v27  ;;  %43 = vst.msk [vmem:[#allocation2] sm:$0x1] %vm42_vm4, %v41_v30  ;;  %s79_s19 = scalar_lea.vmem %s878_s1, %s694_s25  ;;  %s738_s6 = sld [smem:[#allocation7 + $0x281]]  ;;  %v181_v27 = vld [vmem:[%s879_s2 + $0x70] sm:$0xff] }
  0x22   :  { %v74_v31 = vld [vmem:[%s73_s13] sm:$0x1]  ;;  %512 = vmatpush3.bf16.xpose.msk.msra.mxu0 %vm630_vm2, %v510_v23  ;;  %s82_s0 = scalar_lea.vmem %s878_s1, %s700_s27  ;;  %s745_s26 = sld [smem:[#allocation7 + $0x282]] }
  0x23   :  { %v71_v33 = vadd.f32 %v70_v29, %v67_v28  ;;  %513 = vmatprep.subr.bf16.mxu0 %v587_v2  ;;  %v59_v36 = vmul.f32 0.25, %v58_v32  ;;  %v80_v38 = vld [vmem:[%s79_s19] sm:$0x1]  ;;  %s86_s25 = scalar_lea.vmem %s878_s1, %s706_s29  ;;  %s751_s28 = sld [smem:[#allocation7 + $0x283]]  ;;  %v182_v28 = vld [vmem:[%s879_s2 + $0x78] sm:$0xff] }
  0x24   :  { %v83_v40 = vld [vmem:[%s82_s0] sm:$0x1]  ;;  %s90_s9 = scalar_lea.vmem %s878_s1, %s708_s10  ;;  %s96_s29 = scalar_lea.vmem %s878_s1, %s710_s17  ;;  %v530_v29 = vpack.c.bf16 %v182_v28, %v181_v27 }
  0x25   :  { %v75_v37 = vadd.f32 %v74_v31, %v71_v33  ;;  %60 = vst.msk [vmem:[#allocation2 + $0x1] sm:$0x1] %vm42_vm4, %v59_v36  ;;  %v84_v42 = vadd.f32 %v83_v40, %v80_v38  ;;  %v87_v43 = vld [vmem:[%s86_s25] sm:$0x1]  ;;  %s99_s30 = scalar_lea.vmem %s878_s1, %s712_s11  ;;  %s103_s10 = scalar_lea.vmem %s878_s1, %s717_s21 }
  0x26   :  { %v91_v44 = vld [vmem:[%s90_s9] sm:$0x1]  ;;  %s107_s23 = scalar_lea.vmem %s878_s1, %s719_s12  ;;  %s113_s24 = scalar_lea.vmem %s878_s1, %s732_s20 }
  0x27   :  { %v76_v39 = vmul.f32 0.25, %v75_v37  ;;  %v88_v45 = vadd.f32 %v87_v43, %v84_v42  ;;  %v97_v46 = vld [vmem:[%s96_s29] sm:$0x1]  ;;  %s774_s7 = sld [smem:[#allocation7 + $0x300]]  ;;  %s116_s12 = scalar_lea.vmem %s878_s1, %s738_s6 }
  0x28   :  { %v100_v47 = vld [vmem:[%s99_s30] sm:$0x1]  ;;  %s424_s25 = sld [smem:[#allocation7 + $0x301]]  ;;  %s120_s29 = scalar_lea.vmem %s878_s1, %s745_s26 }
  0x29   :  { %77 = vst.msk [vmem:[#allocation2 + $0x2] sm:$0x1] %vm42_vm4, %v76_v39  ;;  %v101_v48 = vadd.f32 %v100_v47, %v97_v46  ;;  %v104_v49 = vld [vmem:[%s103_s10] sm:$0x1]  ;;  %v92_v50 = vadd.f32 %v91_v44, %v88_v45  ;;  %s425_s15 = sld [smem:[#allocation7 + $0x302]]  ;;  %s124_s30 = scalar_lea.vmem %s878_s1, %s751_s28  ;;  %v319_v44 = vld [vmem:[#allocation4] sm:$0xff] }
  0x2a   :  { %516 = vmatpush3.bf16.xpose.msk.msra.mxu0 %vm630_vm2, %v514_v41  ;;  %v108_v51 = vld [vmem:[%s107_s23] sm:$0x1]  ;;  %s426_s5 = sld [smem:[#allocation7 + $0x303]]  ;;  %s427_s18 = sld [smem:[#allocation7 + $0x380]] }
  0x2b   :  { %v114_v52 = vld [vmem:[%s113_s24] sm:$0x1]  ;;  %517 = vmatprep.subr.bf16.mxu0 %v587_v2  ;;  %v105_v55 = vadd.f32 %v104_v49, %v101_v48  ;;  %v93_v57 = vmul.f32 0.25, %v92_v50  ;;  %s428_s10 = sld [smem:[#allocation7 + $0x381]]  ;;  %s429_s19 = sld [smem:[#allocation7 + $0x382]] }
  0x2c   :  { %v117_v56 = vld [vmem:[%s116_s12] sm:$0x1]  ;;  %s798_s26 = sld [smem:[#allocation7 + $0x383]] }
  0x2d   :  { %v118_v58 = vadd.f32 %v117_v56, %v114_v52  ;;  %v121_v59 = vld [vmem:[%s120_s29] sm:$0x1]  ;;  %v109_v60 = vadd.f32 %v108_v51, %v105_v55  ;;  %94 = vst.msk [vmem:[#allocation2 + $0x3] sm:$0x1] %vm42_vm4, %v93_v57  ;;  %s130_s0 = scalar_lea.vmem %s878_s1, %s774_s7 }
  0x2e   :  { %v125_v61 = vld [vmem:[%s124_s30] sm:$0x1]  ;;  %s133_s24 = scalar_lea.vmem %s878_s1, %s424_s25 }
  0x2f   :  { %v122_v63 = vadd.f32 %v121_v59, %v118_v58  ;;  %v110_v0 = vmul.f32 0.25, %v109_v60  ;;  %v131_v3 = vld [vmem:[%s130_s0] sm:$0x1]  ;;  %s137_s12 = scalar_lea.vmem %s878_s1, %s425_s15 }
  0x30   :  { %v134_v5 = vld [vmem:[%s133_s24] sm:$0x1]  ;;  %s141_s27 = scalar_lea.vmem %s878_s1, %s426_s5  ;;  %s147_s15 = scalar_lea.vmem %s878_s1, %s427_s18 }
  0x31   :  { %v126_v1 = vadd.f32 %v125_v61, %v122_v63  ;;  %111 = vst.msk [vmem:[#allocation2 + $0x4] sm:$0x1] %vm42_vm4, %v110_v0  ;;  %v135_v7 = vadd.f32 %v134_v5, %v131_v3  ;;  %v138_v8 = vld [vmem:[%s137_s12] sm:$0x1]  ;;  %s150_s30 = scalar_lea.vmem %s878_s1, %s428_s10  ;;  %s154_s23 = scalar_lea.vmem %s878_s1, %s429_s19 }
  0x32   :  { %520 = vmatpush3.bf16.xpose.msk.msra.mxu0 %vm630_vm2, %v518_v62  ;;  %v142_v11 = vld [vmem:[%s141_s27] sm:$0x1]  ;;  %s158_s17 = scalar_lea.vmem %s878_s1, %s798_s26 }
  0x33   :  { %v127_v6 = vmul.f32 0.25, %v126_v1  ;;  %521 = vmatprep.subr.bf16.mxu0 %v587_v2  ;;  %v139_v12 = vadd.f32 %v138_v8, %v135_v7  ;;  %v148_v13 = vld [vmem:[%s147_s15] sm:$0x1] }
  0x34   :  { %v151_v14 = vld [vmem:[%s150_s30] sm:$0x1] }
  0x35   :  { %128 = vst.msk [vmem:[#allocation2 + $0x5] sm:$0x1] %vm42_vm4, %v127_v6  ;;  %v152_v15 = vadd.f32 %v151_v14, %v148_v13  ;;  %v155_v16 = vld [vmem:[%s154_s23] sm:$0x1]  ;;  %v143_v18 = vadd.f32 %v142_v11, %v139_v12 }
  0x36   :  { %v159_v19 = vld [vmem:[%s158_s17] sm:$0x1] }
  0x37   :  { %v156_v20 = vadd.f32 %v155_v16, %v152_v15  ;;  %v144_v21 = vmul.f32 0.25, %v143_v18  ;;  %v179_v23 = vld [vmem:[%s879_s2 + $0x60] sm:$0xff]  ;;  %s592_s2 = smov [#allocation8]  }
  0x38   :  { %v526_v26 = vpack.c.bf16 %v180_v24, %v179_v23  ;;  %v431_v31 = vld [vmem:[%s880_s3] ss:$0 sm:$0xff]  ;;  %s360_s3 = sshll.u32 %s592_s2, 4  ;;  %s361_s3 = int_to_ptr.vmem [resolvable:$true] %s360_s3 }
  0x39   :  { %v160_v22 = vadd.f32 %v159_v19, %v156_v20  ;;  %145 = vst.msk [vmem:[#allocation2 + $0x6] sm:$0x1] %vm42_vm4, %v144_v21  ;;  %s560_s8 = scalar_lea.vmem %s361_s3, 128  ;;  %p565_p6 = scmp.lt.s32.totalorder %s361_s3, %s361_s3 }
  0x3a   :  { %524 = vmatpush3.bf16.xpose.msk.msra.mxu0 %vm630_vm2, %v522_v17  ;;  %p561_p5 = scmp.ne.s32.totalorder %s361_s3, %s560_s8  ;;  %p566_p7 = scmp.lt.s32.totalorder %s560_s8, %s560_s8 }
  0x3b   :  { %525 = vmatprep.subr.bf16.mxu0 %v587_v2  ;;  %v161_v25 = vmul.f32 0.25, %v160_v22 }
  0x3c   :  { %p567_p8 = por %p566_p7, %p565_p6 }
  0x3d   :  { %162 = vst.msk [vmem:[#allocation2 + $0x7] sm:$0x1] %vm42_vm4, %v161_v25 }
  0x3e   :  { %p568_p9 = pnand %p567_p8, %p561_p5 }
  0x42   :  { %528 = vmatpush3.bf16.xpose.msk.msra.mxu0 %vm630_vm2, %v526_v26 }
  0x43   :  { %529 = vmatprep.subr.bf16.mxu0 %v587_v2 }
  0x44   :  { %v166_v30 = vld [vmem:[#allocation2] sm:$0xff] }
  0x4a   :  { %532 = vmatpush3.bf16.xpose.msk.msra.mxu0 %vm630_vm2, %v530_v29 }
  0x51   :  { %499 = vmatmul.mubr.msk.f32.vlgmr.msra.gmra.mrb[0].mxu0 %vm190_vm0, %v166_v30 }
 0x124   :  { %v308_v2 = vpop.f32.mrb[0].mxu0 }
 0x125   :  { %v309_v32 = vadd.f32 %v431_v31, %v308_v2  ;;  %v500_v33 = vpop.f32.mrb[1].mxu0 }
 0x127   :  { %316 = vmax.xlane.f32.xlu0 %v309_v32 }
 0x1b4   :  { %v317_v36 = vpop.xlane.xlu0 %316 }
 0x1b5   :  { %v318_v37 = vmax.f32 %v315_v35, %v317_v36 }
 0x1b7   :  { %v320_v38 = vsub.f32 %v315_v35, %v318_v37  ;;  %337 = vst.msk [vmem:[#allocation3] sm:$0xff] %vm163_vm1, %v318_v37  ;;  %326 = vperm.xlu0 %540, %v318_v37  }
 0x1b9   :  { %v321_v42 = vmul.f32 1.442695, %v320_v38 }
 0x1be   :  { %v341_v51 = vld [vmem:[#allocation3] sm:$0xff] }
 0x236   :  { %v327_v4 = vpop.permute.xlu0 %326 }
 0x237   :  { %v329_v39 = vsub.f32 %v309_v32, %v327_v4 }
 0x239   :  { %v330_v40 = vmul.f32 1.442695, %v329_v39 }
 0x23b   :  { %542 = vpow2.f32 %v330_v40 }
 0x23c   :  { %544 = vpow2.f32 %v321_v42 }
 0x245   :  { %v543_v41 = vpop.eup %542 }
 0x246   :  { %332 = vadd.xlane.f32.xlu1 %v543_v41  ;;  %v545_v43 = vpop.eup %544 }
 0x247   :  { %v323_v45 = vmul.f32 %v545_v43, %v319_v44 }
 0x2d3   :  { %v333_v46 = vpop.xlane.xlu1 %332 }
 0x2d4   :  { %v334_v47 = vadd.f32 %v333_v46, %v323_v45 }
 0x2d6   :  { %336 = vst.msk [vmem:[#allocation4] sm:$0xff] %vm163_vm1, %v334_v47 }
 0x2dd   :  { %v342_v48 = vld [vmem:[#allocation4] sm:$0xff] }
 0x2de   :  { %546 = vlog2.f32 %v342_v48 }
 0x2e8   :  { %v547_v49 = vpop.eup %546 }
 0x2e9   :  { %v344_v50 = vmul.f32 0.6931472, %v547_v49 }
 0x2eb   :  { %v345_v52 = vadd.f32 %v344_v50, %v341_v51 }
 0x2ed   :  { %349 = vperm.xlu1 %541, %v345_v52  }
 0x36c   :  { %v350_v53 = vpop.permute.xlu1 %349 }
 0x36d   :  { %v352_v54 = vsub.f32 %v309_v32, %v350_v53 }
 0x36f   :  { %353 = vst [vmem:[#allocation8] sm:$0xff] %v352_v54 }
 0x370   :  { %571 = shalt.err (!%p568_p9)
}
 0x371   :  { %s572_s20 = scalar_lea.hbm %s881_s4, 128 }
 0x372   :  { %p573_p10 = scmp.ne.s32.totalorder %s881_s4, %s572_s20  ;;  %p576_p11 = scmp.lt.u32.totalorder %s572_s20, %s881_s4 }
 0x374   :  { %p578_p12 = pnand %p576_p11, %p573_p10 }
 0x376   :  { %581 = shalt.err (!%p578_p12)
}
 0x377   :  { %363 = dma.vmem_to_hbm [thread:$0]  %s361_s3, 128, %s881_s4, [#allocation9]  }
 0x378   :  { %584 = dma.done.wait [#allocation9], 128  }
 0x379   :  { %585 = vsyncadd [#allocation9], 4294967168 }
 0x37a   :  { %367 = vsyncpa [#allocation9], 1 }

</bundles_post_ra>
